<compile_context>
chip_gen: v5e
topology: v5e:2x2
jax: 0.10.0
libtpu: 0.0.40
codegen_flags: <defaults>
</compile_context>

<pallas_src>
import functools

import jax
import jax.numpy as jnp
from jax.experimental import pallas as pl
from jax.experimental.pallas import tpu as pltpu

LANES = 128      # lane width (last dim)
SUB = 8          # sublane tile
TR_MAX = 2048    # rows per block: 2048*128*4 B = 1 MiB per f32 input block
NCORES = 2       # leading "parallel" grid axis (v7x has 2 TensorCores)


def _accumulate(x, y, shift_x, shift_y, odx, ody, odxx, odyy, odxy, valid=None):
    """Add this tile's shifted partial sums into the (8,128) accumulators."""
    dx = x.astype(jnp.float32) - shift_x
    dy = y.astype(jnp.float32) - shift_y
    if valid is not None:
        dx = jnp.where(valid, dx, 0.0)
        dy = jnp.where(valid, dy, 0.0)
    # (TR,128) -> (TR//8, 8, 128): layout-preserving split of the sublane dim;
    # the axis-0 sums are pure VPU adds (no cross-lane work per step).
    dx3 = dx.reshape(-1, SUB, LANES)
    dy3 = dy.reshape(-1, SUB, LANES)
    odx[...] += jnp.sum(dx3, axis=0)
    ody[...] += jnp.sum(dy3, axis=0)
    odxx[...] += jnp.sum(dx3 * dx3, axis=0)
    odyy[...] += jnp.sum(dy3 * dy3, axis=0)
    odxy[...] += jnp.sum(dx3 * dy3, axis=0)


def _ccc_stats_kernel(n_true, tr, bpc, mask_from_block,
                      shifts_ref, x_ref, y_ref,
                      odx, ody, odxx, odyy, odxy):
    c = pl.program_id(0)   # core-range index ("parallel")
    s = pl.program_id(1)   # step inside this core's row range ("arbitrary")

    @pl.when(s == 0)
    def _init():
        for o in (odx, ody, odxx, odyy, odxy):
            o[...] = jnp.zeros_like(o)

    shift_x = shifts_ref[0]
    shift_y = shifts_ref[1]
    x = x_ref[...]
    y = y_ref[...]
    block = c * bpc + s          # logical (unclamped) block index

    @pl.when(block < mask_from_block)
    def _full_block():            # interior block: no masking work at all
        _accumulate(x, y, shift_x, shift_y, odx, ody, odxx, odyy, odxy)

    @pl.when(block >= mask_from_block)
    def _tail_block():            # boundary / duplicated block: mask by index
        row = jax.lax.broadcasted_iota(jnp.int32, x.shape, 0)
        col = jax.lax.broadcasted_iota(jnp.int32, x.shape, 1)
        flat = (block * tr + row) * LANES + col
        valid = flat < n_true
        _accumulate(x, y, shift_x, shift_y, odx, ody, odxx, odyy, odxy, valid)


def ccc_loss(preds, target):
    """1 - concordance_corrcoef(preds, target) via a Pallas TPU kernel."""
    assert preds.shape == target.shape, "preds/target must have the same shape"
    p = jnp.ravel(preds)          # native dtype, no astype in the wrapper
    t = jnp.ravel(target)
    n_true = p.shape[0]
    if n_true < 2:
        raise ValueError("CCCLoss needs at least 2 elements (unbiased var).")

    # Any constant shift gives identical math; the first element keeps the
    # accumulated dx/dy near the data spread (single-pass moment stability).
    shift_x = p[0].astype(jnp.float32)
    shift_y = t[0].astype(jnp.float32)
    shifts = jnp.stack([shift_x, shift_y])

    # (rows, 128) view.  Pad only to a multiple of 128 elements (large case),
    # or to 8*128 for small inputs so the in-kernel (.,8,128) reshape is legal.
    r128 = pl.cdiv(n_true, LANES)
    if r128 >= TR_MAX:
        tr = TR_MAX
        rows = r128
    else:
        rows = pl.cdiv(r128, SUB) * SUB
        tr = rows
    n_pad = rows * LANES
    if n_pad != n_true:
        p = jnp.pad(p, (0, n_pad - n_true))
        t = jnp.pad(t, (0, n_pad - n_true))
    p2 = p.reshape(rows, LANES)
    t2 = t.reshape(rows, LANES)

    blocks_total = pl.cdiv(rows, tr)
    bpc = pl.cdiv(blocks_total, NCORES)          # blocks per core range
    mask_from_block = n_true // (tr * LANES)     # first block needing a mask

    def in_idx(c, s, shifts_ref):
        # Clamp so an over-allocated core range re-reads the last real block;
        # its contribution is zeroed by the flat-index mask in the kernel.
        return (jnp.minimum(c * bpc + s, blocks_total - 1), 0)

    def out_idx(c, s, shifts_ref):
        return (c, 0)             # per-core accumulator block, resident over s

    kernel = functools.partial(_ccc_stats_kernel, n_true, tr, bpc,
                               mask_from_block)

    stat_shape = jax.ShapeDtypeStruct((NCORES * SUB, LANES), jnp.float32)
    out_spec = pl.BlockSpec((SUB, LANES), out_idx)

    sdx, sdy, sdxx, sdyy, sdxy = pl.pallas_call(
        kernel,
        out_shape=(stat_shape,) * 5,
        grid_spec=pltpu.PrefetchScalarGridSpec(
            num_scalar_prefetch=1,
            grid=(NCORES, bpc),
            in_specs=[
                pl.BlockSpec((tr, LANES), in_idx),
                pl.BlockSpec((tr, LANES), in_idx),
            ],
            out_specs=[out_spec] * 5,
        ),
        compiler_params=pltpu.CompilerParams(
            dimension_semantics=("parallel", "arbitrary")),
    )(shifts, p2, t2)

    # Tiny final combine (a few scalar ops) in plain JAX.
    n = jnp.float32(n_true)
    nm1 = jnp.float32(n_true - 1)
    Sdx = jnp.sum(sdx)
    Sdy = jnp.sum(sdy)
    Sdxx = jnp.sum(sdxx)
    Sdyy = jnp.sum(sdyy)
    Sdxy = jnp.sum(sdxy)
    mean_x = shift_x + Sdx / n
    mean_y = shift_y + Sdy / n
    var_x = (Sdxx - Sdx * Sdx / n) / nm1
    var_y = (Sdyy - Sdy * Sdy / n) / nm1
    cov = (Sdxy - Sdx * Sdy / n) / nm1
    md = mean_x - mean_y
    ccc = 2.0 * cov / (var_x + var_y + md * md)
    return 1.0 - ccc


def ccc_loss_ref(preds, target):
    """Pure-JAX reference for validation."""
    p = jnp.ravel(preds).astype(jnp.float32)
    t = jnp.ravel(target).astype(jnp.float32)
    n = p.shape[0]
    mp, mt = jnp.mean(p), jnp.mean(t)
    var_p = jnp.sum((p - mp) ** 2) / (n - 1)
    var_t = jnp.sum((t - mt) ** 2) / (n - 1)
    cov = jnp.sum((p - mp) * (t - mt)) / (n - 1)
    ccc = 2.0 * cov / (var_p + var_t + (mp - mt) ** 2)
    return 1.0 - ccc


if __name__ == "__main__":
    key = jax.random.PRNGKey(0)
    k1, k2, k3, k4 = jax.random.split(key, 4)

    # Small regression-style case: 4*300 = 1200 elements (not a multiple of
    # 128 -> exercises the minimal-pad + in-kernel tail-mask path), nonzero
    # mean to exercise the shifted accumulation.
    preds = jax.random.normal(k1, (4, 300), dtype=jnp.float32) + 2.0
    target = (0.7 * preds
              + 0.3 * jax.random.normal(k2, (4, 300), dtype=jnp.float32) + 0.1)
    loss = jax.block_until_ready(ccc_loss(preds, target))
    ref = jax.block_until_ready(ccc_loss_ref(preds, target))
    assert jnp.allclose(loss, ref, rtol=1e-4, atol=1e-5), (loss, ref)

    # Larger bf16 case: 64*8192 = 524288 elements (multiple of 128 -> no pad
    # copy), two (2048,128) blocks -> one per core range (v7x 2-TC split).
    p_big = (jax.random.normal(k3, (64, 8192), dtype=jnp.float32) + 3.0
             ).astype(jnp.bfloat16)
    t_big = (0.5 * p_big.astype(jnp.float32)
             + 0.5 * jax.random.normal(k4, (64, 8192), dtype=jnp.float32)
             ).astype(jnp.bfloat16)
    loss_big = jax.block_until_ready(ccc_loss(p_big, t_big))
    ref_big = jax.block_until_ready(ccc_loss_ref(p_big, t_big))
    assert jnp.allclose(loss_big, ref_big, rtol=1e-4, atol=1e-4), (loss_big,
                                                                   ref_big)

    print("KERNEL_OK")
</pallas_src>

<mosaic_0001>
module attributes {stable_mosaic.version = 11 : i64} {
  func.func @_ccc_stats_kernel(%arg0: i32, %arg1: i32, %arg2: memref<2xf32, #tpu.memory_space<smem>>, %arg3: memref<16x128xf32, #tpu.memory_space<vmem>>, %arg4: memref<16x128xf32, #tpu.memory_space<vmem>>, %arg5: memref<8x128xf32, #tpu.memory_space<vmem>>, %arg6: memref<8x128xf32, #tpu.memory_space<vmem>>, %arg7: memref<8x128xf32, #tpu.memory_space<vmem>>, %arg8: memref<8x128xf32, #tpu.memory_space<vmem>>, %arg9: memref<8x128xf32, #tpu.memory_space<vmem>>) attributes {dimension_semantics = [#tpu.dimension_semantics<parallel>, #tpu.dimension_semantics<arbitrary>], iteration_bounds = array<i64: 2, 1>, scalar_prefetch = 1 : i64, scratch_operands = 0 : i64, tpu.core_type = #tpu.core_type<tc>, window_params = [{transform_indices = @transform_0, window_bounds = array<i64: 16, 128>}, {transform_indices = @transform_1, window_bounds = array<i64: 16, 128>}, {transform_indices = @transform_2, window_bounds = array<i64: 8, 128>}, {transform_indices = @transform_3, window_bounds = array<i64: 8, 128>}, {transform_indices = @transform_4, window_bounds = array<i64: 8, 128>}, {transform_indices = @transform_5, window_bounds = array<i64: 8, 128>}, {transform_indices = @transform_6, window_bounds = array<i64: 8, 128>}]} {
    %c0_i32 = arith.constant 0 : i32
    %0 = arith.cmpi eq, %arg1, %c0_i32 : i32
    %1 = arith.extui %0 : i1 to i32
    %c0_i32_0 = arith.constant 0 : i32
    %2 = arith.cmpi ne, %1, %c0_i32_0 : i32
    scf.if %2 {
      %cst = arith.constant 0.000000e+00 : f32
      %15 = vector.broadcast %cst : f32 to vector<8x128xf32>
      %c0_9 = arith.constant 0 : index
      %c0_10 = arith.constant 0 : index
      %16 = vector.load %arg5[%c0_9, %c0_10] : memref<8x128xf32, #tpu.memory_space<vmem>>, vector<8x128xf32>
      tpu.vector_store %arg5[%c0_9, %c0_10], %15 {strides = array<i32>} : memref<8x128xf32, #tpu.memory_space<vmem>>, vector<8x128xf32>,
      %cst_11 = arith.constant 0.000000e+00 : f32
      %17 = vector.broadcast %cst_11 : f32 to vector<8x128xf32>
      %c0_12 = arith.constant 0 : index
      %c0_13 = arith.constant 0 : index
      %18 = vector.load %arg6[%c0_12, %c0_13] : memref<8x128xf32, #tpu.memory_space<vmem>>, vector<8x128xf32>
      tpu.vector_store %arg6[%c0_12, %c0_13], %17 {strides = array<i32>} : memref<8x128xf32, #tpu.memory_space<vmem>>, vector<8x128xf32>,
      %cst_14 = arith.constant 0.000000e+00 : f32
      %19 = vector.broadcast %cst_14 : f32 to vector<8x128xf32>
      %c0_15 = arith.constant 0 : index
      %c0_16 = arith.constant 0 : index
      %20 = vector.load %arg7[%c0_15, %c0_16] : memref<8x128xf32, #tpu.memory_space<vmem>>, vector<8x128xf32>
      tpu.vector_store %arg7[%c0_15, %c0_16], %19 {strides = array<i32>} : memref<8x128xf32, #tpu.memory_space<vmem>>, vector<8x128xf32>,
      %cst_17 = arith.constant 0.000000e+00 : f32
      %21 = vector.broadcast %cst_17 : f32 to vector<8x128xf32>
      %c0_18 = arith.constant 0 : index
      %c0_19 = arith.constant 0 : index
      %22 = vector.load %arg8[%c0_18, %c0_19] : memref<8x128xf32, #tpu.memory_space<vmem>>, vector<8x128xf32>
      tpu.vector_store %arg8[%c0_18, %c0_19], %21 {strides = array<i32>} : memref<8x128xf32, #tpu.memory_space<vmem>>, vector<8x128xf32>,
      %cst_20 = arith.constant 0.000000e+00 : f32
      %23 = vector.broadcast %cst_20 : f32 to vector<8x128xf32>
      %c0_21 = arith.constant 0 : index
      %c0_22 = arith.constant 0 : index
      %24 = vector.load %arg9[%c0_21, %c0_22] : memref<8x128xf32, #tpu.memory_space<vmem>>, vector<8x128xf32>
      tpu.vector_store %arg9[%c0_21, %c0_22], %23 {strides = array<i32>} : memref<8x128xf32, #tpu.memory_space<vmem>>, vector<8x128xf32>,
    } else {
    }
    %c0 = arith.constant 0 : index
    %3 = memref.load %arg2[%c0] : memref<2xf32, #tpu.memory_space<smem>>
    %c1 = arith.constant 1 : index
    %4 = memref.load %arg2[%c1] : memref<2xf32, #tpu.memory_space<smem>>
    %c0_1 = arith.constant 0 : index
    %c0_2 = arith.constant 0 : index
    %5 = vector.load %arg3[%c0_1, %c0_2] : memref<16x128xf32, #tpu.memory_space<vmem>>, vector<16x128xf32>
    %c0_3 = arith.constant 0 : index
    %c0_4 = arith.constant 0 : index
    %6 = vector.load %arg4[%c0_3, %c0_4] : memref<16x128xf32, #tpu.memory_space<vmem>>, vector<16x128xf32>
    %c1_i32 = arith.constant 1 : i32
    %7 = arith.muli %arg0, %c1_i32 : i32
    %8 = arith.addi %7, %arg1 : i32
    %c0_i32_5 = arith.constant 0 : i32
    %9 = arith.cmpi slt, %8, %c0_i32_5 : i32
    %10 = arith.extui %9 : i1 to i32
    %c0_i32_6 = arith.constant 0 : i32
    %11 = arith.cmpi ne, %10, %c0_i32_6 : i32
    scf.if %11 {
      %15 = vector.broadcast %3 : f32 to vector<16x128xf32>
      %16 = arith.subf %5, %15 : vector<16x128xf32>
      %17 = vector.broadcast %4 : f32 to vector<16x128xf32>
      %18 = arith.subf %6, %17 : vector<16x128xf32>
      %19 = vector.shape_cast %16 : vector<16x128xf32> to vector<2x8x128xf32>
      %20 = vector.shape_cast %18 : vector<16x128xf32> to vector<2x8x128xf32>
      %c0_9 = arith.constant 0 : index
      %c0_10 = arith.constant 0 : index
      %21 = vector.load %arg5[%c0_9, %c0_10] : memref<8x128xf32, #tpu.memory_space<vmem>>, vector<8x128xf32>
      %cst = arith.constant dense<0.000000e+00> : vector<8x128xf32>
      %22 = vector.multi_reduction <add>, %19, %cst [0] : vector<2x8x128xf32> to vector<8x128xf32>
      %23 = arith.addf %21, %22 : vector<8x128xf32>
      %c0_11 = arith.constant 0 : index
      %c0_12 = arith.constant 0 : index
      %24 = vector.load %arg5[%c0_11, %c0_12] : memref<8x128xf32, #tpu.memory_space<vmem>>, vector<8x128xf32>
      tpu.vector_store %arg5[%c0_11, %c0_12], %23 {strides = array<i32>} : memref<8x128xf32, #tpu.memory_space<vmem>>, vector<8x128xf32>,
      %c0_13 = arith.constant 0 : index
      %c0_14 = arith.constant 0 : index
      %25 = vector.load %arg6[%c0_13, %c0_14] : memref<8x128xf32, #tpu.memory_space<vmem>>, vector<8x128xf32>
      %cst_15 = arith.constant dense<0.000000e+00> : vector<8x128xf32>
      %26 = vector.multi_reduction <add>, %20, %cst_15 [0] : vector<2x8x128xf32> to vector<8x128xf32>
      %27 = arith.addf %25, %26 : vector<8x128xf32>
      %c0_16 = arith.constant 0 : index
      %c0_17 = arith.constant 0 : index
      %28 = vector.load %arg6[%c0_16, %c0_17] : memref<8x128xf32, #tpu.memory_space<vmem>>, vector<8x128xf32>
      tpu.vector_store %arg6[%c0_16, %c0_17], %27 {strides = array<i32>} : memref<8x128xf32, #tpu.memory_space<vmem>>, vector<8x128xf32>,
      %c0_18 = arith.constant 0 : index
      %c0_19 = arith.constant 0 : index
      %29 = vector.load %arg7[%c0_18, %c0_19] : memref<8x128xf32, #tpu.memory_space<vmem>>, vector<8x128xf32>
      %30 = arith.mulf %19, %19 : vector<2x8x128xf32>
      %cst_20 = arith.constant dense<0.000000e+00> : vector<8x128xf32>
      %31 = vector.multi_reduction <add>, %30, %cst_20 [0] : vector<2x8x128xf32> to vector<8x128xf32>
      %32 = arith.addf %29, %31 : vector<8x128xf32>
      %c0_21 = arith.constant 0 : index
      %c0_22 = arith.constant 0 : index
      %33 = vector.load %arg7[%c0_21, %c0_22] : memref<8x128xf32, #tpu.memory_space<vmem>>, vector<8x128xf32>
      tpu.vector_store %arg7[%c0_21, %c0_22], %32 {strides = array<i32>} : memref<8x128xf32, #tpu.memory_space<vmem>>, vector<8x128xf32>,
      %c0_23 = arith.constant 0 : index
      %c0_24 = arith.constant 0 : index
      %34 = vector.load %arg8[%c0_23, %c0_24] : memref<8x128xf32, #tpu.memory_space<vmem>>, vector<8x128xf32>
      %35 = arith.mulf %20, %20 : vector<2x8x128xf32>
      %cst_25 = arith.constant dense<0.000000e+00> : vector<8x128xf32>
      %36 = vector.multi_reduction <add>, %35, %cst_25 [0] : vector<2x8x128xf32> to vector<8x128xf32>
      %37 = arith.addf %34, %36 : vector<8x128xf32>
      %c0_26 = arith.constant 0 : index
      %c0_27 = arith.constant 0 : index
      %38 = vector.load %arg8[%c0_26, %c0_27] : memref<8x128xf32, #tpu.memory_space<vmem>>, vector<8x128xf32>
      tpu.vector_store %arg8[%c0_26, %c0_27], %37 {strides = array<i32>} : memref<8x128xf32, #tpu.memory_space<vmem>>, vector<8x128xf32>,
      %c0_28 = arith.constant 0 : index
      %c0_29 = arith.constant 0 : index
      %39 = vector.load %arg9[%c0_28, %c0_29] : memref<8x128xf32, #tpu.memory_space<vmem>>, vector<8x128xf32>
      %40 = arith.mulf %19, %20 : vector<2x8x128xf32>
      %cst_30 = arith.constant dense<0.000000e+00> : vector<8x128xf32>
      %41 = vector.multi_reduction <add>, %40, %cst_30 [0] : vector<2x8x128xf32> to vector<8x128xf32>
      %42 = arith.addf %39, %41 : vector<8x128xf32>
      %c0_31 = arith.constant 0 : index
      %c0_32 = arith.constant 0 : index
      %43 = vector.load %arg9[%c0_31, %c0_32] : memref<8x128xf32, #tpu.memory_space<vmem>>, vector<8x128xf32>
      tpu.vector_store %arg9[%c0_31, %c0_32], %42 {strides = array<i32>} : memref<8x128xf32, #tpu.memory_space<vmem>>, vector<8x128xf32>,
    } else {
    }
    %c0_i32_7 = arith.constant 0 : i32
    %12 = arith.cmpi sge, %8, %c0_i32_7 : i32
    %13 = arith.extui %12 : i1 to i32
    %c0_i32_8 = arith.constant 0 : i32
    %14 = arith.cmpi ne, %13, %c0_i32_8 : i32
    scf.if %14 {
      %15 = tpu.iota {dimensions = array<i32: 0>} : vector<16x128xi32>
      %16 = tpu.iota {dimensions = array<i32: 1>} : vector<16x128xi32>
      %c16_i32 = arith.constant 16 : i32
      %17 = arith.muli %8, %c16_i32 : i32
      %18 = vector.broadcast %17 : i32 to vector<16x128xi32>
      %19 = arith.addi %18, %15 : vector<16x128xi32>
      %c128_i32 = arith.constant 128 : i32
      %20 = vector.broadcast %c128_i32 : i32 to vector<16x128xi32>
      %21 = arith.muli %19, %20 : vector<16x128xi32>
      %22 = arith.addi %21, %16 : vector<16x128xi32>
      %c1200_i32 = arith.constant 1200 : i32
      %23 = vector.broadcast %c1200_i32 : i32 to vector<16x128xi32>
      %24 = arith.cmpi slt, %22, %23 : vector<16x128xi32>
      %25 = vector.broadcast %3 : f32 to vector<16x128xf32>
      %26 = arith.subf %5, %25 : vector<16x128xf32>
      %27 = vector.broadcast %4 : f32 to vector<16x128xf32>
      %28 = arith.subf %6, %27 : vector<16x128xf32>
      %cst = arith.constant 0.000000e+00 : f32
      %29 = vector.broadcast %cst : f32 to vector<16x128xf32>
      %30 = arith.select %24, %26, %29 : vector<16x128xi1>, vector<16x128xf32>
      %cst_9 = arith.constant 0.000000e+00 : f32
      %31 = vector.broadcast %cst_9 : f32 to vector<16x128xf32>
      %32 = arith.select %24, %28, %31 : vector<16x128xi1>, vector<16x128xf32>
      %33 = vector.shape_cast %30 : vector<16x128xf32> to vector<2x8x128xf32>
      %34 = vector.shape_cast %32 : vector<16x128xf32> to vector<2x8x128xf32>
      %c0_10 = arith.constant 0 : index
      %c0_11 = arith.constant 0 : index
      %35 = vector.load %arg5[%c0_10, %c0_11] : memref<8x128xf32, #tpu.memory_space<vmem>>, vector<8x128xf32>
      %cst_12 = arith.constant dense<0.000000e+00> : vector<8x128xf32>
      %36 = vector.multi_reduction <add>, %33, %cst_12 [0] : vector<2x8x128xf32> to vector<8x128xf32>
      %37 = arith.addf %35, %36 : vector<8x128xf32>
      %c0_13 = arith.constant 0 : index
      %c0_14 = arith.constant 0 : index
      %38 = vector.load %arg5[%c0_13, %c0_14] : memref<8x128xf32, #tpu.memory_space<vmem>>, vector<8x128xf32>
      tpu.vector_store %arg5[%c0_13, %c0_14], %37 {strides = array<i32>} : memref<8x128xf32, #tpu.memory_space<vmem>>, vector<8x128xf32>,
      %c0_15 = arith.constant 0 : index
      %c0_16 = arith.constant 0 : index
      %39 = vector.load %arg6[%c0_15, %c0_16] : memref<8x128xf32, #tpu.memory_space<vmem>>, vector<8x128xf32>
      %cst_17 = arith.constant dense<0.000000e+00> : vector<8x128xf32>
      %40 = vector.multi_reduction <add>, %34, %cst_17 [0] : vector<2x8x128xf32> to vector<8x128xf32>
      %41 = arith.addf %39, %40 : vector<8x128xf32>
      %c0_18 = arith.constant 0 : index
      %c0_19 = arith.constant 0 : index
      %42 = vector.load %arg6[%c0_18, %c0_19] : memref<8x128xf32, #tpu.memory_space<vmem>>, vector<8x128xf32>
      tpu.vector_store %arg6[%c0_18, %c0_19], %41 {strides = array<i32>} : memref<8x128xf32, #tpu.memory_space<vmem>>, vector<8x128xf32>,
      %c0_20 = arith.constant 0 : index
      %c0_21 = arith.constant 0 : index
      %43 = vector.load %arg7[%c0_20, %c0_21] : memref<8x128xf32, #tpu.memory_space<vmem>>, vector<8x128xf32>
      %44 = arith.mulf %33, %33 : vector<2x8x128xf32>
      %cst_22 = arith.constant dense<0.000000e+00> : vector<8x128xf32>
      %45 = vector.multi_reduction <add>, %44, %cst_22 [0] : vector<2x8x128xf32> to vector<8x128xf32>
      %46 = arith.addf %43, %45 : vector<8x128xf32>
      %c0_23 = arith.constant 0 : index
      %c0_24 = arith.constant 0 : index
      %47 = vector.load %arg7[%c0_23, %c0_24] : memref<8x128xf32, #tpu.memory_space<vmem>>, vector<8x128xf32>
      tpu.vector_store %arg7[%c0_23, %c0_24], %46 {strides = array<i32>} : memref<8x128xf32, #tpu.memory_space<vmem>>, vector<8x128xf32>,
      %c0_25 = arith.constant 0 : index
      %c0_26 = arith.constant 0 : index
      %48 = vector.load %arg8[%c0_25, %c0_26] : memref<8x128xf32, #tpu.memory_space<vmem>>, vector<8x128xf32>
      %49 = arith.mulf %34, %34 : vector<2x8x128xf32>
      %cst_27 = arith.constant dense<0.000000e+00> : vector<8x128xf32>
      %50 = vector.multi_reduction <add>, %49, %cst_27 [0] : vector<2x8x128xf32> to vector<8x128xf32>
      %51 = arith.addf %48, %50 : vector<8x128xf32>
      %c0_28 = arith.constant 0 : index
      %c0_29 = arith.constant 0 : index
      %52 = vector.load %arg8[%c0_28, %c0_29] : memref<8x128xf32, #tpu.memory_space<vmem>>, vector<8x128xf32>
      tpu.vector_store %arg8[%c0_28, %c0_29], %51 {strides = array<i32>} : memref<8x128xf32, #tpu.memory_space<vmem>>, vector<8x128xf32>,
      %c0_30 = arith.constant 0 : index
      %c0_31 = arith.constant 0 : index
      %53 = vector.load %arg9[%c0_30, %c0_31] : memref<8x128xf32, #tpu.memory_space<vmem>>, vector<8x128xf32>
      %54 = arith.mulf %33, %34 : vector<2x8x128xf32>
      %cst_32 = arith.constant dense<0.000000e+00> : vector<8x128xf32>
      %55 = vector.multi_reduction <add>, %54, %cst_32 [0] : vector<2x8x128xf32> to vector<8x128xf32>
      %56 = arith.addf %53, %55 : vector<8x128xf32>
      %c0_33 = arith.constant 0 : index
      %c0_34 = arith.constant 0 : index
      %57 = vector.load %arg9[%c0_33, %c0_34] : memref<8x128xf32, #tpu.memory_space<vmem>>, vector<8x128xf32>
      tpu.vector_store %arg9[%c0_33, %c0_34], %56 {strides = array<i32>} : memref<8x128xf32, #tpu.memory_space<vmem>>, vector<8x128xf32>,
    } else {
    }
    return
  }
  func.func @transform_0(%arg0: i32, %arg1: i32, %arg2: memref<2xf32, #tpu.memory_space<smem>>) -> (i32, i32) {
    %c1_i32 = arith.constant 1 : i32
    %0 = arith.muli %arg0, %c1_i32 : i32
    %1 = arith.addi %0, %arg1 : i32
    %c0_i32 = arith.constant 0 : i32
    %2 = arith.minsi %1, %c0_i32 : i32
    %c0_i32_0 = arith.constant 0 : i32
    %c0_i32_1 = arith.constant 0 : i32
    return %2, %c0_i32_0 : i32, i32
  }
  func.func @transform_1(%arg0: i32, %arg1: i32, %arg2: memref<2xf32, #tpu.memory_space<smem>>) -> (i32, i32) {
    %c1_i32 = arith.constant 1 : i32
    %0 = arith.muli %arg0, %c1_i32 : i32
    %1 = arith.addi %0, %arg1 : i32
    %c0_i32 = arith.constant 0 : i32
    %2 = arith.minsi %1, %c0_i32 : i32
    %c0_i32_0 = arith.constant 0 : i32
    %c0_i32_1 = arith.constant 0 : i32
    return %2, %c0_i32_0 : i32, i32
  }
  func.func @transform_2(%arg0: i32, %arg1: i32, %arg2: memref<2xf32, #tpu.memory_space<smem>>) -> (i32, i32) {
    %c0_i32 = arith.constant 0 : i32
    %c0_i32_0 = arith.constant 0 : i32
    return %arg0, %c0_i32 : i32, i32
  }
  func.func @transform_3(%arg0: i32, %arg1: i32, %arg2: memref<2xf32, #tpu.memory_space<smem>>) -> (i32, i32) {
    %c0_i32 = arith.constant 0 : i32
    %c0_i32_0 = arith.constant 0 : i32
    return %arg0, %c0_i32 : i32, i32
  }
  func.func @transform_4(%arg0: i32, %arg1: i32, %arg2: memref<2xf32, #tpu.memory_space<smem>>) -> (i32, i32) {
    %c0_i32 = arith.constant 0 : i32
    %c0_i32_0 = arith.constant 0 : i32
    return %arg0, %c0_i32 : i32, i32
  }
  func.func @transform_5(%arg0: i32, %arg1: i32, %arg2: memref<2xf32, #tpu.memory_space<smem>>) -> (i32, i32) {
    %c0_i32 = arith.constant 0 : i32
    %c0_i32_0 = arith.constant 0 : i32
    return %arg0, %c0_i32 : i32, i32
  }
  func.func @transform_6(%arg0: i32, %arg1: i32, %arg2: memref<2xf32, #tpu.memory_space<smem>>) -> (i32, i32) {
    %c0_i32 = arith.constant 0 : i32
    %c0_i32_0 = arith.constant 0 : i32
    return %arg0, %c0_i32 : i32, i32
  }
}

</mosaic_0001>

<bundles_post_ra>
// kernel: tpu_custom_call.1
= control target key start
LH: loop header
LB: loop body
LE: loop exit
PB: predicated region body
PF: predicated region fallthrough
CT: control target
= control target key end

     0   :  { %s1276_s27 = smov [#allocation3]   ;;  %s1624_s0 = inlined_call_operand.hbm [shape: f32[2], index: 0, kind: input, shape index: {}]   ;;  %s1625_s1 = inlined_call_operand.hbm [shape: f32[16,128], index: 1, kind: input, shape index: {}]   ;;  %s1626_s2 = inlined_call_operand.hbm [shape: f32[16,128], index: 2, kind: input, shape index: {}]   ;;  %s1627_s3 = inlined_call_operand.hbm [shape: f32[16,128], index: 3, kind: output, shape index: {0}]   ;;  %s1628_s4 = inlined_call_operand.hbm [shape: f32[16,128], index: 4, kind: output, shape index: {1}]   ;;  %s1629_s5 = inlined_call_operand.hbm [shape: f32[16,128], index: 5, kind: output, shape index: {2}]   ;;  %s1630_s6 = inlined_call_operand.hbm [shape: f32[16,128], index: 6, kind: output, shape index: {3}]   ;;  %s1631_s7 = inlined_call_operand.hbm [shape: f32[16,128], index: 7, kind: output, shape index: {4}]  }
   0x1   :  { %1637 = sst [smem:[#allocation25_spill]] %s1625_s1  ;;  %s14_s26 = sshll.u32 %s1624_s0, 4  ;;  %s15_s26 = int_to_ptr.hbm [resolvable:$true] %s14_s26 }
   0x2   :  { %1638 = sst [smem:[#allocation26_spill]] %s1626_s2 }
   0x3   :  { %17 = dma.hbm_to_smem %s15_s26, 16, %s1276_s27, [#allocation2] }
   0x4   :  { %1221 = dma.done.wait [#allocation2], 16 }
   0x5   :  { %1222 = vsyncadd [#allocation2], 4294967280 }
   0x6   :  { %20 = sfence }
   0x7   :  { %21 = vsyncpa [#allocation5], 0 }
   0x8   :  { %23 = vsyncpa [#allocation5 + $0x1], 0 }
   0x9   :  { %24 = vsyncpa [#allocation8], 0 }
   0xa   :  { %26 = vsyncpa [#allocation8 + $0x1], 0 }
   0xb   :  { %27 = vsyncpa [#allocation6], 0 }
   0xc   :  { %29 = vsyncpa [#allocation6 + $0x1], 0 }
   0xd   :  { %30 = vsyncpa [#allocation11], 0 }
   0xe   :  { %32 = vsyncpa [#allocation11 + $0x1], 0 }
   0xf   :  { %33 = vsyncpa [#allocation14], 0 }
  0x10   :  { %35 = vsyncpa [#allocation14 + $0x1], 0  ;;  %s1325_s28 = smov 0   ;;  %s1327_s29 = smov 0  }
  0x11   :  { %s1329_s0 = smov 0   ;;  %s1331_s30 = smov 0  }
  0x12   :  { %s1333_s8 = smov 0   ;;  %s1335_s9 = smov 0  }
  0x13   :  { %s1337_s10 = smov 0   ;;  %s1339_s11 = smov 0  }
  0x14 LB: > { %1639 = sst [smem:[#allocation22_spill]] %s1262_s8  ;;  %s1364_s12 = sadd.s32 4294967295, %s1274_s11   ;;  %s1274_s11 = sphi %s1339_s11, %s41_s11   ;;  %s1270_s10 = sphi %s1337_s10, %s1654_s10   ;;  %s1266_s9 = sphi %s1335_s9, %s1653_s9   ;;  %s1262_s8 = sphi %s1333_s8, %s1614_s8   ;;  %s1258_s30 = sphi %s1331_s30, %s1652_s30   ;;  %s1254_s0 = sphi %s1329_s0, %s1657_s0   ;;  %s1250_s29 = sphi %s1327_s29, %s1656_s29   ;;  %s1246_s28 = sphi %s1325_s28, %s1655_s28  }
  0x15   : > { %1640 = sst [smem:[#allocation23_spill]] %s1270_s10  ;;  %s1632_s13 = sadd.s32 4294967294, %s1274_s11  }
  0x16   : > { %s53_s14 = sadd.s32 1, %s1270_s10  ;;  %p1243_p1 = scmp.ne.s32.totalorder %s1262_s8, 0 }
  0x17   : > { %p55_p0 = scmp.ge.s32.totalorder %s53_s14, 2  ;;  %p74_p2 = scmp.eq.s32.totalorder %s1274_s11, 0 }
  0x18   : > { %p79_p3 = scmp.ne.s32.totalorder %s1262_s8, %s1258_s30  ;;  %p80_p5 = scmp.eq.s32.totalorder %s1364_s12, 0 }
  0x19   : > { %s1659_s14 = smov (%p55_p0, %s53_s14), 0  ;;  %p1373_p4 = por %p1243_p1, %p74_p2 }
  0x1a   : > { %1641 = sst [smem:[#allocation24_spill]] %s1659_s14  ;;  %p1378_p6 = por %p80_p5, %p79_p3 }
  0x1b   : > { %s121_s17 = ssub.s32 %s1270_s10, %s1659_s14  ;;  %s124_s18 = sadd.s32 1, %s1254_s0 }
  0x1c   : > { %p122_p7 = scmp.eq.s32.totalorder %s121_s17, 0  ;;  %p134_p8 = scmp.ne.s32.totalorder %s1254_s0, %s1250_s29 }
  0x1d   : > { %p135_p9 = scmp.eq.s32.totalorder %s1364_s12, 1  ;;  %p140_p10 = scmp.ne.s32.totalorder %s1250_s29, %s1246_s28 }
  0x1e   : > { %s1386_s19 = scalar_select %p122_p7, %s1254_s0, %s124_s18  }
  0x1f   : > { %p141_p11 = scmp.eq.s32.totalorder %s1632_s13, 1  ;;  %p1395_p12 = por %p135_p9, %p134_p8 }
  0x20   : > { %p825_p13 = scmp.ge.s32.totalorder %s1274_s11, 2  ;;  %p895_p1 = scmp.lt.s32.totalorder %s1274_s11, 2 }
  0x21   : > { %p1400_p0 = por %p141_p11, %p140_p10  ;;  %s1646_s1 = sld [smem:[#allocation25_spill]] }
  0x22   : > { %s1277_s25 = smov [#allocation4]   ;;  %p1410_p2 = pnand %p895_p1, %p1373_p4 }
  0x23   : > { %s280_s26 = sshll.u32 %s1277_s25, 4  ;;  %p832_p3 = scmp.ge.s32.totalorder %s1274_s11, 1  ;;  %s281_s26 = int_to_ptr.vmem [resolvable:$true] %s280_s26 }
  0x24   : > { %p313_p5 = scmp.lt.s32.totalorder %s1274_s11, 3  ;;  %p989_p8 = pneg %p1410_p2 }
  0x27   : > { %s278_s24 = sshll.u32 %s1646_s1, 4  ;;  %s992_s22 = scalar_lea.hbm %s1646_s1, 16  ;;  %s279_s24 = int_to_ptr.hbm [resolvable:$true] %s278_s24 }
  0x28   : > { %s985_s30 = sshra.s32 %s279_s24, 4  ;;  %s986_s30 = int_to_ptr.hbm [resolvable:$true] %s985_s30 }
  0x29   : > { %s987_s17 = scalar_lea.hbm %s986_s30, 16 }
  0x2a   : > { %p988_p7 = scmp.ne.s32.totalorder %s986_s30, %s987_s17  ;;  %p994_p4 = scmp.lt.s32.totalorder %s992_s22, %s987_s17 }
  0x2c   : > { %p990_p9 = pnand %p989_p8, %p988_p7 }
  0x2e   : > { %p991_p10 = pneg %p990_p9 }
  0x30   : > { %p996_p11 = pnand %p994_p4, %p991_p10 }
  0x32   : > { %999 = shalt.err (!%p996_p11)
}
  0x33   : > { %s1278_s23 = smov 128   ;;  %s1279_s25 = smov 8  }
  0x34   : > { %875 = dma.hbm_to_vmem [thread:$0]  (!%p1410_p2), %s279_s24, 256, %s281_s26, [#allocation5], %s1278_s23, %s1278_s23, %s1279_s25  }
  0x35   : > { %p1430_p1 = pnand %p832_p3, %p313_p5  ;;  %s1649_s2 = sld [smem:[#allocation26_spill]] }
  0x36   : > { %s1280_s15 = smov [#allocation7]  }
  0x37   : > { %s305_s22 = sshll.u32 %s1280_s15, 4  ;;  %s306_s22 = int_to_ptr.vmem [resolvable:$true] %s305_s22 }
  0x3b   : > { %s303_s17 = sshll.u32 %s1649_s2, 4  ;;  %s1022_s10 = scalar_lea.hbm %s1649_s2, 16  ;;  %s304_s17 = int_to_ptr.hbm [resolvable:$true] %s303_s17 }
  0x3c   : > { %s1015_s1 = sshra.s32 %s304_s17, 4  ;;  %s1016_s1 = int_to_ptr.hbm [resolvable:$true] %s1015_s1 }
  0x3d   : > { %s1017_s14 = scalar_lea.hbm %s1016_s1, 16 }
  0x3e   : > { %p1018_p7 = scmp.ne.s32.totalorder %s1016_s1, %s1017_s14  ;;  %p1024_p3 = scmp.lt.s32.totalorder %s1022_s10, %s1017_s14 }
  0x40   : > { %p1020_p9 = pnand %p1018_p7, %p989_p8 }
  0x42   : > { %p1021_p10 = pneg %p1020_p9 }
  0x44   : > { %p1026_p5 = pnand %p1024_p3, %p1021_p10 }
  0x46   : > { %1029 = shalt.err (!%p1026_p5)
}
  0x47   : > { %878 = dma.hbm_to_vmem [thread:$0]  (!%p1410_p2), %s304_s17, 256, %s306_s22, [#allocation8], %s1278_s23, %s1278_s23, %s1279_s25  }
  0x48   : > { %317 = sbr.rel (%p1430_p1) target bundleno = 203 (0xcb), region = 28  ;;  %s319_s1 = sand.u32 (!%p1430_p1), 1, %s1262_s8  }
  0x49   : > { %s833_s13 = sshll.u32 (!%p1430_p1), %s319_s1, 4  ;;  %s320_s18 = scalar_lea.sflag (!%p1430_p1), [#allocation5], %s319_s1 }
  0x4a   : > { %s323_s15 = scalar_lea.vmem (!%p1430_p1), [#allocation4], %s833_s13 }
  0x4d   : > { %1224 = dma.done.wait (%p1378_p6), %s320_s18, 256  }
  0x4e   : > { %1226 = vsyncadd (%p1378_p6), %s320_s18, 4294967040  ;;  %s330_s10 = scalar_lea.sflag [#allocation8], %s319_s1  ;;  %s333_s14 = scalar_lea.vmem [#allocation7], %s833_s13 }
  0x4f   : > { %1228 = dma.done.wait (%p1378_p6), %s330_s10, 256  }
  0x50   : > { %1230 = vsyncadd (%p1378_p6), %s330_s10, 4294967040  ;;  %s1635_s27 = sand.u32 1, %s1250_s29   ;;  %s1457_s23 = sld [smem:[#allocation3]]  ;;  %v1281_v0 = vmov 0.0   ;;  %v407_v1 = vld [vmem:[%s323_s15] sm:$0xff]  ;;  %v408_v2 = vld [vmem:[%s323_s15 + $0x8] sm:$0xff] }
  0x51   : > { %s835_s25 = sshll.u32 %s1635_s27, 3  ;;  %s1461_s30 = sld [smem:[#allocation3 + $0x1]]  ;;  %v409_v3 = vld [vmem:[%s333_s14] sm:$0xff]  ;;  %v410_v4 = vld [vmem:[%s333_s14 + $0x8] sm:$0xff] }
  0x52   : > { %s1463_s17 = scalar_lea.vmem [#allocation9], %s835_s25  ;;  %s1466_s22 = scalar_lea.vmem [#allocation10], %s835_s25 }
  0x53   : > { %400 = vst [vmem:[%s1463_s17] sm:$0xff] %v1281_v0  ;;  %s1469_s16 = scalar_lea.vmem [#allocation12], %s835_s25  ;;  %s1472_s24 = scalar_lea.vmem [#allocation13], %s835_s25 }
  0x54   : > { %401 = vst [vmem:[%s1466_s22] sm:$0xff] %v1281_v0  ;;  %s1475_s26 = scalar_lea.vmem [#allocation15], %s835_s25  ;;  %p841_p6 = scmp.ge.s32.totalorder %s1266_s9, 0 }
  0x55   : > { %402 = vst [vmem:[%s1469_s16] sm:$0xff] %v1281_v0 }
  0x56   : > { %403 = vst [vmem:[%s1472_s24] sm:$0xff] %v1281_v0  ;;  %415 = sbr.rel (%p841_p6) target bundleno = 103 (0x67), region = 44 }
  0x57   : > { %404 = vst [vmem:[%s1475_s26] sm:$0xff] %v1281_v0 }
  0x5b   : > { %v416_v5 = vstv %s1457_s23  ;;  %v419_v6 = vstv %s1461_s30  ;;  %v422_v11 = vld [vmem:[%s1463_s17] sm:$0xff]  ;;  %v426_v12 = vld [vmem:[%s1466_s22] sm:$0xff] }
  0x5c   : > { %v417_v7 = vsub.f32 %v407_v1, %v416_v5  ;;  %v418_v8 = vsub.f32 %v408_v2, %v416_v5  ;;  %v420_v9 = vsub.f32 %v409_v3, %v419_v6  ;;  %v421_v10 = vsub.f32 %v410_v4, %v419_v6  ;;  %v430_v17 = vld [vmem:[%s1469_s16] sm:$0xff] }
  0x5d   : > { %v436_v25 = vld [vmem:[%s1472_s24] sm:$0xff] }
  0x5e   : > { %v423_v13 = vadd.f32 %v418_v8, %v417_v7  ;;  %v427_v14 = vadd.f32 %v421_v10, %v420_v9  ;;  %v431_v15 = vmul.f32 %v417_v7, %v417_v7  ;;  %v432_v16 = vmul.f32 %v418_v8, %v418_v8  ;;  %v442_v26 = vld [vmem:[%s1475_s26] sm:$0xff] }
  0x5f   : > { %v437_v18 = vmul.f32 %v420_v9, %v420_v9  ;;  %v438_v19 = vmul.f32 %v421_v10, %v421_v10  ;;  %v443_v20 = vmul.f32 %v420_v9, %v417_v7  ;;  %v444_v21 = vmul.f32 %v421_v10, %v418_v8 }
  0x60   : > { %v424_v22 = vadd.f32 %v423_v13, %v422_v11  ;;  %v428_v23 = vadd.f32 %v427_v14, %v426_v12  ;;  %v433_v24 = vadd.f32 %v432_v16, %v431_v15 }
  0x61   : > { %v439_v27 = vadd.f32 %v438_v19, %v437_v18  ;;  %v445_v28 = vadd.f32 %v444_v21, %v443_v20 }
  0x62   : > { %425 = vst [vmem:[%s1463_s17] sm:$0xff] %v424_v22  ;;  %v434_v29 = vadd.f32 %v433_v24, %v430_v17 }
  0x63   : > { %429 = vst [vmem:[%s1466_s22] sm:$0xff] %v428_v23  ;;  %v440_v30 = vadd.f32 %v439_v27, %v436_v25  ;;  %v446_v31 = vadd.f32 %v445_v28, %v442_v26 }
  0x64   : > { %435 = vst [vmem:[%s1469_s16] sm:$0xff] %v434_v29 }
  0x65   : > { %441 = vst [vmem:[%s1472_s24] sm:$0xff] %v440_v30 }
  0x66   : > { %447 = vst [vmem:[%s1475_s26] sm:$0xff] %v446_v31 }
  0x67 PF: > { %p842_p2 = scmp.lt.s32.totalorder %s1266_s9, 0 }
  0x68   : > { %s843_s1 = sshll.u32 (!%p842_p2), %s1266_s9, 4 }
  0x69   : > { %451 = sbr.rel (%p842_p2) target bundleno = 133 (0x85), region = 48 }
  0x6e   : > { %v452_v32 = vlaneseq  ;;  %v458_v33 = vstv %s843_s1  ;;  %v467_v35 = vstv %s1457_s23  ;;  %v470_v39 = vstv %s1461_s30  ;;  %v477_v54 = vld [vmem:[%s1463_s17] sm:$0xff] }
  0x6f   : > { %v468_v42 = vsub.f32 %v407_v1, %v467_v35  ;;  %v471_v43 = vsub.f32 %v409_v3, %v470_v39  ;;  %v469_v46 = vsub.f32 %v408_v2, %v467_v35  ;;  %v472_v47 = vsub.f32 %v410_v4, %v470_v39  ;;  %v481_v56 = vld [vmem:[%s1466_s22] sm:$0xff]  ;;  %v485_v62 = vld [vmem:[%s1469_s16] sm:$0xff] }
  0x70   : > { %v453_v34 = vshrl.u32 %v452_v32, 7  ;;  %v456_v37 = vand.u32 127, %v452_v32  ;;  %v491_v63 = vld [vmem:[%s1472_s24] sm:$0xff]  ;;  %v497_v5 = vld [vmem:[%s1475_s26] sm:$0xff] }
  0x72   : > { %v454_v36 = vadd.s32 8, %v453_v34  ;;  %v459_v38 = vadd.s32 %v458_v33, %v453_v34 }
  0x74   : > { %v460_v40 = vadd.s32 %v458_v33, %v454_v36  ;;  %v461_v41 = vmul.u32 128, %v459_v38 }
  0x76   : > { %v462_v44 = vmul.u32 128, %v460_v40  ;;  %v463_v45 = vadd.s32 %v461_v41, %v456_v37 }
  0x78   : > { %v464_v48 = vadd.s32 %v462_v44, %v456_v37  ;;  %vm465_vm0 = vcmp.lt.s32.totalorder %v463_v45, 1200 }
  0x79   : > { %v473_v49 = vsel %vm465_vm0, %v468_v42, 0.0  ;;  %v475_v50 = vsel %vm465_vm0, %v471_v43, 0.0 }
  0x7a   : > { %vm466_vm1 = vcmp.lt.s32.totalorder %v464_v48, 1200  ;;  %v486_v51 = vmul.f32 %v473_v49, %v473_v49  ;;  %v492_v52 = vmul.f32 %v475_v50, %v475_v50  ;;  %v498_v57 = vmul.f32 %v475_v50, %v473_v49 }
  0x7b   : > { %v474_v53 = vsel %vm466_vm1, %v469_v46, 0.0  ;;  %v476_v55 = vsel %vm466_vm1, %v472_v47, 0.0 }
  0x7c   : > { %v478_v58 = vadd.f32 %v474_v53, %v473_v49  ;;  %v482_v59 = vadd.f32 %v476_v55, %v475_v50  ;;  %v487_v60 = vmul.f32 %v474_v53, %v474_v53  ;;  %v493_v61 = vmul.f32 %v476_v55, %v476_v55 }
  0x7d   : > { %v499_v0 = vmul.f32 %v476_v55, %v474_v53 }
  0x7e   : > { %v479_v1 = vadd.f32 %v478_v58, %v477_v54  ;;  %v483_v2 = vadd.f32 %v482_v59, %v481_v56  ;;  %v488_v3 = vadd.f32 %v487_v60, %v486_v51  ;;  %v494_v4 = vadd.f32 %v493_v61, %v492_v52 }
  0x7f   : > { %v500_v6 = vadd.f32 %v499_v0, %v498_v57 }
  0x80   : > { %480 = vst [vmem:[%s1463_s17] sm:$0xff] %v479_v1  ;;  %v489_v7 = vadd.f32 %v488_v3, %v485_v62  ;;  %v495_v8 = vadd.f32 %v494_v4, %v491_v63 }
  0x81   : > { %484 = vst [vmem:[%s1466_s22] sm:$0xff] %v483_v2  ;;  %v501_v9 = vadd.f32 %v500_v6, %v497_v5 }
  0x82   : > { %490 = vst [vmem:[%s1469_s16] sm:$0xff] %v489_v7 }
  0x83   : > { %496 = vst [vmem:[%s1472_s24] sm:$0xff] %v495_v8 }
  0x84   : > { %502 = vst [vmem:[%s1475_s26] sm:$0xff] %v501_v9 }
  0x85 PF: > { %s508_s13 = sand.u32 1, %s1364_s12   ;;  %s1507_s18 = sshll.u32 %s1266_s9, 3 }
  0x86   : > { %s548_s14 = scalar_lea.hbm %s1628_s4, %s1507_s18  ;;  %s550_s23 = sshll.u32 %s1466_s22, 4  ;;  %s551_s23 = int_to_ptr.vmem [resolvable:$true] %s550_s23 }
  0x87   : > { %s552_s25 = sshll.u32 %s548_s14, 4  ;;  %s1514_s30 = scalar_lea.sflag [#allocation11], %s508_s13  ;;  %s553_s25 = int_to_ptr.hbm [resolvable:$true] %s552_s25 }
  0x88   : > { %s1059_s1 = sshra.s32 %s553_s25, 4  ;;  %s1065_s2 = scalar_lea.hbm %s1628_s4, 16  ;;  %s1060_s1 = int_to_ptr.hbm [resolvable:$true] %s1059_s1 }
  0x89   : > { %s1061_s27 = scalar_lea.hbm %s1060_s1, 8  ;;  %p1066_p1 = scmp.lt.s32.totalorder %s1060_s1, %s1628_s4 }
  0x8a   : > { %p1062_p8 = scmp.ne.s32.totalorder %s1060_s1, %s1061_s27  ;;  %p1067_p7 = scmp.lt.s32.totalorder %s1065_s2, %s1061_s27 }
  0x8c   : > { %p1063_p4 = pnand %p1062_p8, %p1395_p12  ;;  %p1068_p9 = por %p1067_p7, %p1066_p1 }
  0x8e   : > { %p1064_p11 = pneg %p1063_p4 }
  0x90   : > { %p1069_p10 = pnand %p1068_p9, %p1064_p11 }
  0x92   : > { %1072 = shalt.err (!%p1069_p10)
}
  0x93   : > { %863 = dma.vmem_to_hbm [thread:$0]  (%p1395_p12), %s551_s23, 128, %s553_s25, %s1514_s30  }
  0x94   : > { %s576_s14 = scalar_lea.hbm %s1630_s6, %s1507_s18  ;;  %s578_s9 = sshll.u32 %s1472_s24, 4  ;;  %s579_s9 = int_to_ptr.vmem [resolvable:$true] %s578_s9 }
  0x95   : > { %s580_s12 = sshll.u32 %s576_s14, 4  ;;  %s1532_s8 = scalar_lea.sflag [#allocation14], %s508_s13  ;;  %s581_s12 = int_to_ptr.hbm [resolvable:$true] %s580_s12 }
  0x96   : > { %s1087_s2 = sshra.s32 %s581_s12, 4  ;;  %s1093_s23 = scalar_lea.hbm %s1630_s6, 16  ;;  %s1088_s2 = int_to_ptr.hbm [resolvable:$true] %s1087_s2 }
  0x97   : > { %s1089_s27 = scalar_lea.hbm %s1088_s2, 8  ;;  %p1094_p2 = scmp.lt.s32.totalorder %s1088_s2, %s1630_s6 }
  0x98   : > { %p1090_p3 = scmp.ne.s32.totalorder %s1088_s2, %s1089_s27  ;;  %p1095_p8 = scmp.lt.s32.totalorder %s1093_s23, %s1089_s27 }
  0x9a   : > { %p1091_p5 = pnand %p1090_p3, %p1395_p12  ;;  %p1096_p4 = por %p1095_p8, %p1094_p2 }
  0x9c   : > { %p1092_p6 = pneg %p1091_p5 }
  0x9e   : > { %p1097_p11 = pnand %p1096_p4, %p1092_p6 }
  0xa0   : > { %1100 = shalt.err (!%p1097_p11)
}
  0xa1   : > { %865 = dma.vmem_to_hbm [thread:$0]  (%p1395_p12), %s579_s9, 128, %s581_s12, %s1532_s8  }
  0xa2   : > { %s534_s10 = scalar_lea.hbm %s1627_s3, %s1507_s18  ;;  %s536_s14 = sshll.u32 %s1463_s17, 4  ;;  %s537_s14 = int_to_ptr.vmem [resolvable:$true] %s536_s14 }
  0xa3   : > { %s538_s1 = sshll.u32 %s534_s10, 4  ;;  %s1650_s2 = sand.u32 1, %s1250_s29   ;;  %s539_s1 = int_to_ptr.hbm [resolvable:$true] %s538_s1 }
  0xa4   : > { %s504_s27 = scalar_lea.sflag [#allocation6], %s1650_s2  ;;  %s1115_s15 = sshra.s32 %s539_s1, 4  ;;  %s1116_s15 = int_to_ptr.hbm [resolvable:$true] %s1115_s15 }
  0xa5   : > { %s1117_s23 = scalar_lea.hbm %s1116_s15, 8  ;;  %s1121_s9 = scalar_lea.hbm %s1627_s3, 16 }
  0xa6   : > { %p1118_p1 = scmp.ne.s32.totalorder %s1116_s15, %s1117_s23  ;;  %p1122_p10 = scmp.lt.s32.totalorder %s1116_s15, %s1627_s3 }
  0xa7   : > { %p1123_p3 = scmp.lt.s32.totalorder %s1121_s9, %s1117_s23 }
  0xa8   : > { %p1119_p7 = pnand %p1118_p1, %p1395_p12 }
  0xa9   : > { %p1124_p5 = por %p1123_p3, %p1122_p10 }
  0xaa   : > { %p1120_p9 = pneg %p1119_p7 }
  0xac   : > { %p1125_p6 = pnand %p1124_p5, %p1120_p9 }
  0xae   : > { %1128 = shalt.err (!%p1125_p6)
}
  0xaf   : > { %862 = dma.vmem_to_hbm [thread:$0]  (%p1395_p12), %s537_s14, 128, %s539_s1, %s504_s27  }
  0xb0   : > { %s562_s10 = scalar_lea.hbm %s1629_s5, %s1507_s18  ;;  %s564_s2 = sshll.u32 %s1469_s16, 4  ;;  %s565_s2 = int_to_ptr.vmem [resolvable:$true] %s564_s2 }
  0xb1   : > { %s566_s25 = sshll.u32 %s562_s10, 4  ;;  %s590_s22 = scalar_lea.hbm %s1631_s7, %s1507_s18  ;;  %s567_s25 = int_to_ptr.hbm [resolvable:$true] %s566_s25 }
  0xb2   : > { %s1143_s9 = sshra.s32 %s567_s25, 4  ;;  %s1149_s27 = scalar_lea.hbm %s1629_s5, 16  ;;  %s1144_s9 = int_to_ptr.hbm [resolvable:$true] %s1143_s9 }
  0xb3   : > { %s1145_s12 = scalar_lea.hbm %s1144_s9, 8  ;;  %p1150_p11 = scmp.lt.s32.totalorder %s1144_s9, %s1629_s5 }
  0xb4   : > { %p1146_p2 = scmp.ne.s32.totalorder %s1144_s9, %s1145_s12  ;;  %p1151_p1 = scmp.lt.s32.totalorder %s1149_s27, %s1145_s12 }
  0xb6   : > { %p1147_p8 = pnand %p1146_p2, %p1395_p12  ;;  %p1152_p7 = por %p1151_p1, %p1150_p11 }
  0xb8   : > { %p1148_p4 = pneg %p1147_p8 }
  0xba   : > { %p1153_p9 = pnand %p1152_p7, %p1148_p4 }
  0xbc   : > { %1156 = shalt.err (!%p1153_p9)
}
  0xbd   : > { %864 = dma.vmem_to_hbm [thread:$0]  (%p1395_p12), %s565_s2, 128, %s567_s25, %s1514_s30  }
  0xbe   : > { %s592_s18 = sshll.u32 %s1475_s26, 4  ;;  %s594_s17 = sshll.u32 %s590_s22, 4  ;;  %s593_s18 = int_to_ptr.vmem [resolvable:$true] %s592_s18  ;;  %s595_s17 = int_to_ptr.hbm [resolvable:$true] %s594_s17 }
  0xbf   : > { %s1171_s13 = sshra.s32 %s595_s17, 4  ;;  %s1177_s9 = scalar_lea.hbm %s1631_s7, 16  ;;  %s1172_s13 = int_to_ptr.hbm [resolvable:$true] %s1171_s13 }
  0xc0   : > { %s1173_s10 = scalar_lea.hbm %s1172_s13, 8  ;;  %p1178_p6 = scmp.lt.s32.totalorder %s1172_s13, %s1631_s7 }
  0xc1   : > { %p1174_p10 = scmp.ne.s32.totalorder %s1172_s13, %s1173_s10  ;;  %p1179_p2 = scmp.lt.s32.totalorder %s1177_s9, %s1173_s10 }
  0xc3   : > { %p1175_p3 = pnand %p1174_p10, %p1395_p12  ;;  %p1180_p8 = por %p1179_p2, %p1178_p6 }
  0xc5   : > { %p1176_p5 = pneg %p1175_p3 }
  0xc7   : > { %p1181_p4 = pnand %p1180_p8, %p1176_p5 }
  0xc9   : > { %1184 = shalt.err (!%p1181_p4)
}
  0xca   : > { %866 = dma.vmem_to_hbm [thread:$0]  (%p1395_p12), %s593_s18, 128, %s595_s17, %s1532_s8  }
  0xcb PF: > { %s606_s26 = sand.u32 1, %s1246_s28   ;;  %p880_p11 = pnand %p825_p13, %p1400_p0 }
  0xcc   : > { %s607_s30 = scalar_lea.sflag [#allocation6], %s606_s26 }
  0xcd   : > { %p881_p1 = pneg %p880_p11 }
  0xcf   : > { %1232 = dma.done.wait (%p881_p1), %s607_s30, 128  }
  0xd0   : > { %1234 = vsyncadd (%p881_p1), %s607_s30, 4294967168  ;;  %s1651_s2 = sadd.s32 4294967294, %s1274_s11  }
  0xd1   : > { %s616_s25 = sand.u32 1, %s1651_s2  }
  0xd2   : > { %s617_s22 = scalar_lea.sflag [#allocation11], %s616_s25 }
  0xd3   : > { %1236 = dma.done.wait (%p881_p1), %s617_s22, 256  }
  0xd4   : > { %1238 = vsyncadd (%p881_p1), %s617_s22, 4294967040  ;;  %s637_s20 = scalar_lea.sflag [#allocation14], %s616_s25 }
  0xd5   : > { %1240 = dma.done.wait (%p881_p1), %s637_s20, 256  }
  0xd6   : > { %1242 = vsyncadd (%p881_p1), %s637_s20, 4294967040  ;;  %s41_s11 = sadd.s32 1, %s1274_s11   ;;  %s1652_s30 = sld [smem:[#allocation22_spill]] }
  0xd7   : > { %p38_p12 = scmp.ge.s32.totalorder %s41_s11, 4   ;;  %s1653_s9 = sld [smem:[#allocation23_spill]] }
  0xd8   : > { %s1654_s10 = sld [smem:[#allocation24_spill]]  ;;  %s1655_s28 = smov %s1250_s29 }
  0xd9   : > { %s1656_s29 = smov %s1254_s0  ;;  %s1657_s0 = smov %s1386_s19 }
  0xda   : > { %s1614_s8 = smov 0   ;;  %40 = sbr.rel (!%p38_p12) target bundleno = 20 (0x14), region = 162 }
  0xdf   :  { %653 = vsyncpa [#allocation5], 1 }
  0xe0   :  { %655 = vsyncpa [#allocation5 + $0x1], 1 }
  0xe1   :  { %656 = vsyncpa [#allocation8], 1 }
  0xe2   :  { %658 = vsyncpa [#allocation8 + $0x1], 1 }
  0xe3   :  { %659 = vsyncpa [#allocation6], 1 }
  0xe4   :  { %661 = vsyncpa [#allocation6 + $0x1], 1 }
  0xe5   :  { %662 = vsyncpa [#allocation11], 1 }
  0xe6   :  { %664 = vsyncpa [#allocation11 + $0x1], 1 }
  0xe7   :  { %665 = vsyncpa [#allocation14], 1 }
  0xe8   :  { %667 = vsyncpa [#allocation14 + $0x1], 1 }

</bundles_post_ra>
